<compile_context>
chip_gen: v6e
topology: v6e:2x2x1
jax: 0.10.0
libtpu: 0.0.40
codegen_flags: <defaults>
</compile_context>

<pallas_src>
import functools

import jax
import jax.numpy as jnp
from jax.experimental import pallas as pl
from jax.experimental.pallas import tpu as pltpu

MAX_COEFF = 10.0
LOSS_SHARPNESS = 5
ALPHA = 0.4

_ONEHOT_VMEM_BUDGET = 8 * 1024 * 1024    # bytes for the (TILE_E, TILE_F) one-hot
_VMEM_LIMIT_BYTES = 48 * 1024 * 1024     # fits v7x (64 MiB/TC) and v5e/v6e (128 MiB)
_TILE_E_MAX = 2048
_TILE_E_MIN = 128
_TILE_F_MAX = 512


def _round_up(x, m):
    return (x + m - 1) // m * m


def _sat_loss_kernel(coeff_ref, eps_ref, cid_ref, ef_ref, ep_ref, out_ref,
                     acc_ref, *, num_functions):
    tile_e = ef_ref.shape[1]
    tile_f = acc_ref.shape[1]
    fi = pl.program_id(0)                      # clause-tile index (outer)
    ei = pl.program_id(1)                      # edge-tile index (inner, reduction)
    f_base = fi * tile_f

    @pl.when((fi == 0) & (ei == 0))
    def _init_out():
        out_ref[0, 0] = 0.0

    @pl.when(ei == 0)
    def _init_acc():
        acc_ref[...] = jnp.zeros_like(acc_ref)

    coeff = coeff_ref[0, 0]

    ef = ef_ref[...]                           # (1, TILE_E) signed literal (+/-1), 0 on pad
    ep = ep_ref[...]                           # (1, TILE_E) prediction of the edge's variable

    # edge_values = ef * pred + (1 - ef)/2 ;  weights = exp(coeff * edge_values)
    edge_values = ef * ep + (1.0 - ef) * 0.5
    weights = jnp.exp(coeff * edge_values)     # EUP
    lhs = jnp.concatenate([weights * edge_values, weights], axis=0)   # (2, TILE_E)

    # One-hot clause membership for this clause tile: lane iota vs. cid column.
    cid = cid_ref[...]                         # (TILE_E, 1) int32, -1 on padded edges
    col = jax.lax.broadcasted_iota(jnp.int32, (tile_e, tile_f), 1) + f_base
    onehot = (col == cid).astype(jnp.float32)  # (TILE_E, TILE_F); pad edges -> all-zero rows

    # Fused per-clause segment sums of [weights*edge_values ; weights] in one matmul.
    acc_ref[...] += jnp.dot(lhs, onehot, preferred_element_type=jnp.float32)

    @pl.when(ei == pl.num_programs(1) - 1)
    def _finalize():
        eps = eps_ref[0, 0]
        nominator = acc_ref[0:1, :]            # (1, TILE_F), lane-dense
        denominator = acc_ref[1:2, :]
        clause_value = denominator / jnp.maximum(nominator, eps)
        t = clause_value - 1.0
        t2 = t * t
        clause_value = 1.0 + t2 * t2 * t       # (.)**5 via explicit squaring
        logs = jnp.log(jnp.maximum(clause_value, eps))          # safe_log
        cidx = jax.lax.broadcasted_iota(jnp.int32, (1, tile_f), 1) + f_base
        logs = jnp.where(cidx < num_functions, logs, 0.0)        # mask padded clauses
        out_ref[0, 0] += jnp.sum(logs) / num_functions           # mean over true Fn


def sat_loss_evaluator(variable_prediction, label, graph_map,
                       batch_variable_map, batch_function_map,
                       edge_feature, meta_data, global_step, eps,
                       *, alpha=ALPHA):
    """Pallas port of SatLossEvaluator.forward."""
    del label, meta_data, batch_variable_map   # only sizes / unused in the forward

    E = graph_map.shape[1]
    Fn = batch_function_map.shape[0]

    # Temperature: min(step**alpha, 10) -- scalar glue, computed outside the kernel.
    coeff = jnp.minimum(jnp.asarray(global_step, jnp.float32) ** alpha,
                        jnp.float32(MAX_COEFF)).reshape(1, 1)
    eps_arr = jnp.asarray(eps, jnp.float32).reshape(1, 1)

    # Hoisted gather: prediction of each edge's variable (was a sparse mm).
    vp_flat = variable_prediction.astype(jnp.float32).reshape(-1)
    edge_pred = jnp.take(vp_flat, graph_map[0].astype(jnp.int32))
    ef_flat = edge_feature.astype(jnp.float32).reshape(-1)
    cid_flat = graph_map[1].astype(jnp.int32)

    # Two-level tiling: clause tiles (outer) x edge tiles (inner).
    tile_f = min(_TILE_F_MAX, _round_up(Fn, 128))
    num_f_tiles = pl.cdiv(Fn, tile_f)
    tile_cap = max(_TILE_E_MIN,
                   (_ONEHOT_VMEM_BUDGET // (tile_f * 4)) // 128 * 128)
    tile_e = max(_TILE_E_MIN, min(_TILE_E_MAX, tile_cap, _round_up(E, 128)))
    num_e_tiles = pl.cdiv(E, tile_e)
    e_pad = num_e_tiles * tile_e

    pad = e_pad - E
    cid_col = jnp.pad(cid_flat, (0, pad), constant_values=-1).reshape(e_pad, 1)
    ef_row = jnp.pad(ef_flat, (0, pad)).reshape(1, e_pad)
    ep_row = jnp.pad(edge_pred, (0, pad)).reshape(1, e_pad)

    kernel = functools.partial(_sat_loss_kernel, num_functions=Fn)

    smem_spec = pl.BlockSpec(memory_space=pltpu.MemorySpace.SMEM)
    cid_spec = pl.BlockSpec((tile_e, 1), lambda f, e: (e, 0))
    row_spec = pl.BlockSpec((1, tile_e), lambda f, e: (0, e))

    out = pl.pallas_call(
        kernel,
        out_shape=jax.ShapeDtypeStruct((1, 1), jnp.float32),
        grid=(num_f_tiles, num_e_tiles),
        in_specs=[smem_spec,   # coeff (1,1)
                  smem_spec,   # eps   (1,1)
                  cid_spec,    # clause ids   (E_pad, 1)
                  row_spec,    # edge feature (1, E_pad)
                  row_spec],   # edge pred    (1, E_pad)
        out_specs=smem_spec,
        scratch_shapes=[pltpu.VMEM((2, tile_f), jnp.float32)],  # [nom ; den] per clause tile
        compiler_params=pltpu.CompilerParams(
            dimension_semantics=("arbitrary", "arbitrary"),
            vmem_limit_bytes=_VMEM_LIMIT_BYTES),
    )(coeff, eps_arr, cid_col, ef_row, ep_row)
    return out[0, 0]


def _reference_loss(variable_prediction, graph_map, edge_feature, num_functions,
                    global_step, eps, alpha=ALPHA):
    """Pure-JAX reference mirroring the PyTorch forward."""
    coeff = jnp.minimum(jnp.asarray(global_step, jnp.float32) ** alpha, MAX_COEFF)
    ef = edge_feature[:, 0]
    edge_values = ef * variable_prediction[graph_map[0], 0]
    edge_values = edge_values + (1.0 - ef) * 0.5
    weights = jnp.exp(coeff * edge_values)
    nom = jax.ops.segment_sum(weights * edge_values, graph_map[1], num_functions)
    den = jax.ops.segment_sum(weights, graph_map[1], num_functions)
    cv = den / jnp.maximum(nom, eps)
    cv = 1.0 + (cv - 1.0) ** LOSS_SHARPNESS
    return jnp.mean(jnp.log(jnp.maximum(cv, eps)))


if __name__ == "__main__":
    key = jax.random.PRNGKey(0)
    k1, k2, k3 = jax.random.split(key, 3)

    # Small synthetic 3-SAT-ish instance: 20 variables, 12 clauses, 3 literals/clause.
    num_vars = 20
    num_funcs = 12
    lits_per_clause = 3
    num_edges = num_funcs * lits_per_clause

    var_ids = jax.random.randint(k1, (num_edges,), 0, num_vars, dtype=jnp.int32)
    clause_ids = jnp.repeat(jnp.arange(num_funcs, dtype=jnp.int32), lits_per_clause)
    graph_map = jnp.stack([var_ids, clause_ids], axis=0)            # (2, E)

    signs = jnp.where(jax.random.bernoulli(k2, 0.5, (num_edges,)), 1.0, -1.0)
    edge_feature = signs.astype(jnp.float32).reshape(num_edges, 1)  # (E, 1), +/-1

    variable_prediction = jax.nn.sigmoid(
        jax.random.normal(k3, (num_vars, 1), dtype=jnp.float32))    # (V, 1) in (0,1)

    label = jnp.zeros((num_vars, 1), jnp.float32)                   # unused
    batch_variable_map = jnp.zeros((num_vars,), jnp.int32)
    batch_function_map = jnp.zeros((num_funcs,), jnp.int32)
    meta_data = None
    global_step = jnp.array(50.0, jnp.float32)
    eps = jnp.array(1e-10, jnp.float32)

    loss = sat_loss_evaluator(variable_prediction, label, graph_map,
                              batch_variable_map, batch_function_map,
                              edge_feature, meta_data, global_step, eps)
    loss = jax.block_until_ready(loss)

    ref = _reference_loss(variable_prediction, graph_map, edge_feature,
                          num_funcs, global_step, eps)
    assert jnp.allclose(loss, ref, rtol=1e-4, atol=1e-4), (loss, ref)

    print("KERNEL_OK")
</pallas_src>

<mosaic_0001>
module attributes {stable_mosaic.version = 11 : i64} {
  func.func @_sat_loss_kernel(%arg0: i32, %arg1: i32, %arg2: memref<1x1xf32, #tpu.memory_space<smem>>, %arg3: memref<1x1xf32, #tpu.memory_space<smem>>, %arg4: memref<128x1xi32, #tpu.memory_space<vmem>>, %arg5: memref<1x128xf32, #tpu.memory_space<vmem>>, %arg6: memref<1x128xf32, #tpu.memory_space<vmem>>, %arg7: memref<1x1xf32, #tpu.memory_space<smem>>, %arg8: memref<2x128xf32, #tpu.memory_space<vmem>>) attributes {dimension_semantics = [#tpu.dimension_semantics<arbitrary>, #tpu.dimension_semantics<arbitrary>], iteration_bounds = array<i64: 1, 1>, scalar_prefetch = 0 : i64, scratch_operands = 1 : i64, tpu.core_type = #tpu.core_type<tc>, window_params = [{transform_indices = @transform_0, window_bounds = array<i64: 1, 1>}, {transform_indices = @transform_1, window_bounds = array<i64: 1, 1>}, {transform_indices = @transform_2, window_bounds = array<i64: 128, 1>}, {transform_indices = @transform_3, window_bounds = array<i64: 1, 128>}, {transform_indices = @transform_4, window_bounds = array<i64: 1, 128>}, {transform_indices = @transform_5, window_bounds = array<i64: 1, 1>}]} {
    %c128_i32 = arith.constant 128 : i32
    %0 = arith.muli %arg0, %c128_i32 : i32
    %c0_i32 = arith.constant 0 : i32
    %1 = arith.cmpi eq, %arg0, %c0_i32 : i32
    %c0_i32_0 = arith.constant 0 : i32
    %2 = arith.cmpi eq, %arg1, %c0_i32_0 : i32
    %3 = arith.andi %1, %2 : i1
    %4 = arith.extui %3 : i1 to i32
    %c0_i32_1 = arith.constant 0 : i32
    %5 = arith.cmpi ne, %4, %c0_i32_1 : i32
    scf.if %5 {
      %cst_19 = arith.constant 0.000000e+00 : f32
      %c0_20 = arith.constant 0 : index
      %c0_21 = arith.constant 0 : index
      %38 = memref.load %arg7[%c0_20, %c0_21] : memref<1x1xf32, #tpu.memory_space<smem>>
      memref.store %cst_19, %arg7[%c0_20, %c0_21] : memref<1x1xf32, #tpu.memory_space<smem>>
    } else {
    }
    %c0_i32_2 = arith.constant 0 : i32
    %6 = arith.cmpi eq, %arg1, %c0_i32_2 : i32
    %7 = arith.extui %6 : i1 to i32
    %c0_i32_3 = arith.constant 0 : i32
    %8 = arith.cmpi ne, %7, %c0_i32_3 : i32
    scf.if %8 {
      %cst_19 = arith.constant 0.000000e+00 : f32
      %38 = vector.broadcast %cst_19 : f32 to vector<2x128xf32>
      %c0_20 = arith.constant 0 : index
      %c0_21 = arith.constant 0 : index
      %39 = vector.load %arg8[%c0_20, %c0_21] : memref<2x128xf32, #tpu.memory_space<vmem>>, vector<2x128xf32>
      tpu.vector_store %arg8[%c0_20, %c0_21], %38 {strides = array<i32>} : memref<2x128xf32, #tpu.memory_space<vmem>>, vector<2x128xf32>,
    } else {
    }
    %c0 = arith.constant 0 : index
    %c0_4 = arith.constant 0 : index
    %9 = memref.load %arg2[%c0, %c0_4] : memref<1x1xf32, #tpu.memory_space<smem>>
    %c0_5 = arith.constant 0 : index
    %c0_6 = arith.constant 0 : index
    %10 = vector.load %arg5[%c0_5, %c0_6] : memref<1x128xf32, #tpu.memory_space<vmem>>, vector<1x128xf32>
    %c0_7 = arith.constant 0 : index
    %c0_8 = arith.constant 0 : index
    %11 = vector.load %arg6[%c0_7, %c0_8] : memref<1x128xf32, #tpu.memory_space<vmem>>, vector<1x128xf32>
    %12 = arith.mulf %10, %11 : vector<1x128xf32>
    %cst = arith.constant 1.000000e+00 : f32
    %13 = vector.broadcast %cst : f32 to vector<1x128xf32>
    %14 = arith.subf %13, %10 : vector<1x128xf32>
    %cst_9 = arith.constant 5.000000e-01 : f32
    %15 = vector.broadcast %cst_9 : f32 to vector<1x128xf32>
    %16 = arith.mulf %14, %15 : vector<1x128xf32>
    %17 = arith.addf %12, %16 : vector<1x128xf32>
    %18 = vector.broadcast %9 : f32 to vector<1x128xf32>
    %19 = arith.mulf %18, %17 : vector<1x128xf32>
    %20 = math.exp %19 : vector<1x128xf32>
    %21 = arith.mulf %20, %17 : vector<1x128xf32>
    %22 = tpu.concatenate %21, %20 in 0 : vector<1x128xf32>, vector<1x128xf32> -> vector<2x128xf32>
    %c0_10 = arith.constant 0 : index
    %c0_11 = arith.constant 0 : index
    %23 = vector.load %arg4[%c0_10, %c0_11] : memref<128x1xi32, #tpu.memory_space<vmem>>, vector<128x1xi32>
    %24 = tpu.iota {dimensions = array<i32: 1>} : vector<128x128xi32>
    %25 = vector.broadcast %0 : i32 to vector<128x128xi32>
    %26 = arith.addi %24, %25 : vector<128x128xi32>
    %27 = vector.broadcast %23 : vector<128x1xi32> to vector<128x128xi32>
    %28 = arith.cmpi eq, %26, %27 : vector<128x128xi32>
    %29 = arith.extui %28 : vector<128x128xi1> to vector<128x128xi32>
    %30 = arith.sitofp %29 : vector<128x128xi32> to vector<128x128xf32>
    %c0_12 = arith.constant 0 : index
    %c0_13 = arith.constant 0 : index
    %31 = vector.load %arg8[%c0_12, %c0_13] : memref<2x128xf32, #tpu.memory_space<vmem>>, vector<2x128xf32>
    %cst_14 = arith.constant dense<0.000000e+00> : vector<2x128xf32>
    %32 = tpu.matmul %22, %30, %cst_14 {dimension_numbers = #tpu.dot_dimension_numbers<[1], [0], [0], [1], [0, 0, 1, 1], [], []>} : vector<2x128xf32>, vector<128x128xf32>, vector<2x128xf32> -> vector<2x128xf32>
    %33 = arith.addf %31, %32 : vector<2x128xf32>
    %c0_15 = arith.constant 0 : index
    %c0_16 = arith.constant 0 : index
    %34 = vector.load %arg8[%c0_15, %c0_16] : memref<2x128xf32, #tpu.memory_space<vmem>>, vector<2x128xf32>
    tpu.vector_store %arg8[%c0_15, %c0_16], %33 {strides = array<i32>} : memref<2x128xf32, #tpu.memory_space<vmem>>, vector<2x128xf32>,
    %c0_i32_17 = arith.constant 0 : i32
    %35 = arith.cmpi eq, %arg1, %c0_i32_17 : i32
    %36 = arith.extui %35 : i1 to i32
    %c0_i32_18 = arith.constant 0 : i32
    %37 = arith.cmpi ne, %36, %c0_i32_18 : i32
    scf.if %37 {
      %c0_19 = arith.constant 0 : index
      %c0_20 = arith.constant 0 : index
      %38 = memref.load %arg3[%c0_19, %c0_20] : memref<1x1xf32, #tpu.memory_space<smem>>
      %c0_21 = arith.constant 0 : index
      %c0_22 = arith.constant 0 : index
      %39 = vector.load %arg8[%c0_21, %c0_22] : memref<2x128xf32, #tpu.memory_space<vmem>>, vector<1x128xf32>
      %c1 = arith.constant 1 : index
      %c0_23 = arith.constant 0 : index
      %40 = vector.load %arg8[%c1, %c0_23] : memref<2x128xf32, #tpu.memory_space<vmem>>, vector<1x128xf32>
      %41 = vector.broadcast %38 : f32 to vector<1x128xf32>
      %42 = arith.maximumf %39, %41 : vector<1x128xf32>
      %43 = arith.divf %40, %42 : vector<1x128xf32>
      %cst_24 = arith.constant 1.000000e+00 : f32
      %44 = vector.broadcast %cst_24 : f32 to vector<1x128xf32>
      %45 = arith.subf %43, %44 : vector<1x128xf32>
      %46 = arith.mulf %45, %45 : vector<1x128xf32>
      %47 = arith.mulf %46, %46 : vector<1x128xf32>
      %48 = arith.mulf %47, %45 : vector<1x128xf32>
      %cst_25 = arith.constant 1.000000e+00 : f32
      %49 = vector.broadcast %cst_25 : f32 to vector<1x128xf32>
      %50 = arith.addf %49, %48 : vector<1x128xf32>
      %51 = vector.broadcast %38 : f32 to vector<1x128xf32>
      %52 = arith.maximumf %50, %51 : vector<1x128xf32>
      %53 = math.log %52 : vector<1x128xf32>
      %54 = tpu.iota {dimensions = array<i32: 1>} : vector<1x128xi32>
      %55 = vector.broadcast %0 : i32 to vector<1x128xi32>
      %56 = arith.addi %54, %55 : vector<1x128xi32>
      %c12_i32 = arith.constant 12 : i32
      %57 = vector.broadcast %c12_i32 : i32 to vector<1x128xi32>
      %58 = arith.cmpi slt, %56, %57 : vector<1x128xi32>
      %cst_26 = arith.constant 0.000000e+00 : f32
      %59 = vector.broadcast %cst_26 : f32 to vector<1x128xf32>
      %60 = arith.select %58, %53, %59 : vector<1x128xi1>, vector<1x128xf32>
      %c0_27 = arith.constant 0 : index
      %c0_28 = arith.constant 0 : index
      %61 = memref.load %arg7[%c0_27, %c0_28] : memref<1x1xf32, #tpu.memory_space<smem>>
      %62 = vector.shape_cast %60 : vector<1x128xf32> to vector<1x1x128xf32>
      %cst_29 = arith.constant dense<0.000000e+00> : vector<1xf32>
      %63 = vector.multi_reduction <add>, %62, %cst_29 [1, 2] : vector<1x1x128xf32> to vector<1xf32>
      %64 = vector.shape_cast %63 : vector<1xf32> to vector<1x1x1xf32>
      %65 = vector.extract %64[0, 0, 0] : f32 from vector<1x1x1xf32>
      %cst_30 = arith.constant 1.200000e+01 : f32
      %66 = arith.divf %65, %cst_30 : f32
      %67 = arith.addf %61, %66 : f32
      %c0_31 = arith.constant 0 : index
      %c0_32 = arith.constant 0 : index
      %68 = memref.load %arg7[%c0_31, %c0_32] : memref<1x1xf32, #tpu.memory_space<smem>>
      memref.store %67, %arg7[%c0_31, %c0_32] : memref<1x1xf32, #tpu.memory_space<smem>>
    } else {
    }
    return
  }
  func.func @transform_0(%arg0: i32, %arg1: i32) -> (i32, i32) {
    %c0_i32 = arith.constant 0 : i32
    %c0_i32_0 = arith.constant 0 : i32
    %c0_i32_1 = arith.constant 0 : i32
    return %c0_i32, %c0_i32_0 : i32, i32
  }
  func.func @transform_1(%arg0: i32, %arg1: i32) -> (i32, i32) {
    %c0_i32 = arith.constant 0 : i32
    %c0_i32_0 = arith.constant 0 : i32
    %c0_i32_1 = arith.constant 0 : i32
    return %c0_i32, %c0_i32_0 : i32, i32
  }
  func.func @transform_2(%arg0: i32, %arg1: i32) -> (i32, i32) {
    %c0_i32 = arith.constant 0 : i32
    %c0_i32_0 = arith.constant 0 : i32
    return %arg1, %c0_i32 : i32, i32
  }
  func.func @transform_3(%arg0: i32, %arg1: i32) -> (i32, i32) {
    %c0_i32 = arith.constant 0 : i32
    %c0_i32_0 = arith.constant 0 : i32
    return %c0_i32, %arg1 : i32, i32
  }
  func.func @transform_4(%arg0: i32, %arg1: i32) -> (i32, i32) {
    %c0_i32 = arith.constant 0 : i32
    %c0_i32_0 = arith.constant 0 : i32
    return %c0_i32, %arg1 : i32, i32
  }
  func.func @transform_5(%arg0: i32, %arg1: i32) -> (i32, i32) {
    %c0_i32 = arith.constant 0 : i32
    %c0_i32_0 = arith.constant 0 : i32
    %c0_i32_1 = arith.constant 0 : i32
    return %c0_i32, %c0_i32_0 : i32, i32
  }
}

</mosaic_0001>

<bundles_post_ra>
// kernel: tpu_custom_call.1
= control target key start
LH: loop header
LB: loop body
LE: loop exit
PB: predicated region body
PF: predicated region fallthrough
CT: control target
= control target key end

     0   :  { %v406_v2 = vmov 0   ;;  %v407_v3 = vmov 0.0   ;;  %s559_s0 = inlined_call_operand.<no memory space> [shape: f32[1,1], index: 0, kind: input, shape index: {}]   ;;  %s560_s1 = inlined_call_operand.<no memory space> [shape: f32[1,1], index: 1, kind: input, shape index: {}]   ;;  %s561_s2 = inlined_call_operand.vmem [shape: s32[128,1], index: 2, kind: input, shape index: {}]   ;;  %s562_s3 = inlined_call_operand.vmem [shape: f32[1,128], index: 3, kind: input, shape index: {}]   ;;  %s563_s4 = inlined_call_operand.vmem [shape: f32[1,128], index: 4, kind: input, shape index: {}]   ;;  %s564_s5 = inlined_call_operand.hbm [shape: f32[1,1], index: 5, kind: output, shape index: {}]  }
   0x1   :  { %v71_v0 = vld [vmem:[%s561_s2 + $0x78] sm:$0xff]  ;;  %v69_v1 = vld [vmem:[%s561_s2 + $0x68] sm:$0xff]  ;;  %389 = vset.pattern.permute.xlu1 %v406_v2  ;;  %388 = vset.pattern.permute.xlu0 %v406_v2  ;;  %35 = vst [vmem:[#allocation2] sm:$0x3] %v407_v3  ;;  %v70_v4 = vld [vmem:[%s561_s2 + $0x70] sm:$0xff] }
   0x2   :  { %122 = vperm.xlu0 %388, %v71_v0   ;;  %116 = vperm.xlu1 %389, %v69_v1   ;;  %v68_v5 = vld [vmem:[%s561_s2 + $0x60] sm:$0xff] }
   0x3   :  { %345 = vmatprep.subr.mxu0 %v407_v3 }
   0x4   :  { %12 = vsyncpa [#allocation6], 0  ;;  %v67_v6 = vld [vmem:[%s561_s2 + $0x58] sm:$0xff]  ;;  %v66_v7 = vld [vmem:[%s561_s2 + $0x50] sm:$0xff]  ;;  %vm408_vm0 = vmmov 0   ;;  %v49_v20 = vlaneseq  ;;  %v43_v28 = vstv %s559_s0  ;;  %v409_v29 = vmov 1.0  }
   0x5   :  { %v65_v8 = vld [vmem:[%s561_s2 + $0x48] sm:$0xff]  ;;  %v64_v9 = vld [vmem:[%s561_s2 + $0x40] sm:$0xff]  ;;  %v63_v10 = vld [vmem:[%s561_s2 + $0x38] sm:$0xff]  ;;  %377 = vmatprep.mubr.msk.f32.mxu0 %vm408_vm0, %v407_v3  ;;  %vm54_vm15 = vcmask 1040384   ;;  %v251_v56 = vstv %s560_s1  ;;  %s410_s30 = smov [#allocation5]  }
   0x6   :  { %119 = vperm.xlu0 %388, %v70_v4   ;;  %113 = vperm.xlu1 %389, %v68_v5   ;;  %v62_v11 = vld [vmem:[%s561_s2 + $0x30] sm:$0xff]  ;;  %v61_v12 = vld [vmem:[%s561_s2 + $0x28] sm:$0xff]  ;;  %v60_v13 = vld [vmem:[%s561_s2 + $0x20] sm:$0xff]  ;;  %v498_v24 = vand.u32 127, %v49_v20  ;;  %v50_v42 = vshrl.u32 %v49_v20, 7 }
   0x7   :  { %v59_v14 = vld [vmem:[%s561_s2 + $0x18] sm:$0xff]  ;;  %v58_v15 = vld [vmem:[%s561_s2 + $0x10] sm:$0xff]  ;;  %v57_v16 = vld [vmem:[%s561_s2 + $0x8] sm:$0xff] }
   0x8   :  { %v56_v17 = vld [vmem:[%s561_s2] sm:$0xff]  ;;  %v51_v45 = vsub.s32 0, %v50_v42 }
   0x9   :  { %v37_v18 = vld [vmem:[%s562_s3] sm:$0x1] }
   0xa   :  { %110 = vperm.xlu0 %388, %v67_v6   ;;  %107 = vperm.xlu1 %389, %v66_v7   ;;  %v40_v19 = vsub.f32 1.0, %v37_v18  ;;  %v38_v21 = vld [vmem:[%s563_s4] sm:$0x1] }
   0xb   :  { %v39_v22 = vmul.f32 %v38_v21, %v37_v18  ;;  %v172_v52 = vld [vmem:[#allocation2] sm:$0x3] }
   0xc   :  { %v41_v23 = vmul.f32 0.5, %v40_v19 }
   0xe   :  { %104 = vperm.xlu0 %388, %v65_v8   ;;  %101 = vperm.xlu1 %389, %v64_v9   ;;  %v42_v27 = vadd.f32 %v41_v23, %v39_v22 }
  0x10   :  { %v44_v32 = vmul.f32 %v43_v28, %v42_v27 }
  0x12   :  { %98 = vperm.xlu0 %388, %v63_v10   ;;  %95 = vperm.xlu1 %389, %v62_v11   ;;  %v45_v35 = vmul.f32 1.442695, %v44_v32 }
  0x14   :  { %390 = vpow2.f32 %v45_v35 }
  0x16   :  { %92 = vperm.xlu0 %388, %v61_v12   ;;  %89 = vperm.xlu1 %389, %v60_v13  }
  0x1a   :  { %86 = vperm.xlu0 %388, %v59_v14   ;;  %83 = vperm.xlu1 %389, %v58_v15  }
  0x1e   :  { %80 = vperm.xlu0 %388, %v57_v16   ;;  %77 = vperm.xlu1 %389, %v56_v17  }
  0x21   :  { %v391_v46 = vpop.eup %390 }
  0x22   :  { %v47_v48 = vmul.f32 %v391_v46, %v42_v27  ;;  %v52_v49 = vrot.slane %v391_v46, %v51_v45 }
  0x24   :  { %v55_v51 = vsel %vm54_vm15, %v47_v48, %v52_v49 }
  0x7d   :  { %v123_v25 = vpop.permute.xlu0 %122  ;;  %v117_v26 = vpop.permute.xlu1 %116 }
  0x7e   :  { %vm139_vm1 = vcmp.eq.s32.totalorder %v498_v24, %v123_v25  ;;  %vm137_vm3 = vcmp.eq.s32.totalorder %v498_v24, %v117_v26 }
  0x7f   :  { %346 = vmatpush3.msk.msra.mxu0 %vm139_vm1, %v409_v29 }
  0x80   :  { %347 = vmatprep.subr.mxu0 %v407_v3 }
  0x81   :  { %v120_v30 = vpop.permute.xlu0 %119  ;;  %v114_v31 = vpop.permute.xlu1 %113 }
  0x82   :  { %vm138_vm2 = vcmp.eq.s32.totalorder %v498_v24, %v120_v30  ;;  %vm136_vm4 = vcmp.eq.s32.totalorder %v498_v24, %v114_v31 }
  0x83   :  { %348 = vmatpush3.msk.msra.mxu0 %vm138_vm2, %v409_v29  ;;  %vm263_vm2 = vcmp.lt.s32.totalorder %v498_v24, 12 }
  0x84   :  { %349 = vmatprep.subr.mxu0 %v407_v3 }
  0x85   :  { %v111_v33 = vpop.permute.xlu0 %110  ;;  %v108_v34 = vpop.permute.xlu1 %107  ;;  %350 = vmatpush3.msk.msra.mxu0 %vm137_vm3, %v409_v29 }
  0x86   :  { %351 = vmatprep.subr.mxu0 %v407_v3  ;;  %vm135_vm5 = vcmp.eq.s32.totalorder %v498_v24, %v111_v33  ;;  %vm134_vm6 = vcmp.eq.s32.totalorder %v498_v24, %v108_v34 }
  0x87   :  { %352 = vmatpush3.msk.msra.mxu0 %vm136_vm4, %v409_v29 }
  0x88   :  { %353 = vmatprep.subr.mxu0 %v407_v3 }
  0x89   :  { %v105_v36 = vpop.permute.xlu0 %104  ;;  %v102_v37 = vpop.permute.xlu1 %101  ;;  %354 = vmatpush3.msk.msra.mxu0 %vm135_vm5, %v409_v29 }
  0x8a   :  { %355 = vmatprep.subr.mxu0 %v407_v3  ;;  %vm133_vm7 = vcmp.eq.s32.totalorder %v498_v24, %v105_v36  ;;  %vm132_vm8 = vcmp.eq.s32.totalorder %v498_v24, %v102_v37 }
  0x8b   :  { %356 = vmatpush3.msk.msra.mxu0 %vm134_vm6, %v409_v29 }
  0x8c   :  { %357 = vmatprep.subr.mxu0 %v407_v3 }
  0x8d   :  { %v99_v38 = vpop.permute.xlu0 %98  ;;  %v96_v39 = vpop.permute.xlu1 %95  ;;  %358 = vmatpush3.msk.msra.mxu0 %vm133_vm7, %v409_v29 }
  0x8e   :  { %359 = vmatprep.subr.mxu0 %v407_v3  ;;  %vm131_vm9 = vcmp.eq.s32.totalorder %v498_v24, %v99_v38  ;;  %vm130_vm10 = vcmp.eq.s32.totalorder %v498_v24, %v96_v39 }
  0x8f   :  { %360 = vmatpush3.msk.msra.mxu0 %vm132_vm8, %v409_v29 }
  0x90   :  { %361 = vmatprep.subr.mxu0 %v407_v3 }
  0x91   :  { %v93_v40 = vpop.permute.xlu0 %92  ;;  %v90_v41 = vpop.permute.xlu1 %89  ;;  %362 = vmatpush3.msk.msra.mxu0 %vm131_vm9, %v409_v29 }
  0x92   :  { %363 = vmatprep.subr.mxu0 %v407_v3  ;;  %vm129_vm11 = vcmp.eq.s32.totalorder %v498_v24, %v93_v40  ;;  %vm128_vm12 = vcmp.eq.s32.totalorder %v498_v24, %v90_v41 }
  0x93   :  { %364 = vmatpush3.msk.msra.mxu0 %vm130_vm10, %v409_v29 }
  0x94   :  { %365 = vmatprep.subr.mxu0 %v407_v3 }
  0x95   :  { %v87_v43 = vpop.permute.xlu0 %86  ;;  %v84_v44 = vpop.permute.xlu1 %83  ;;  %366 = vmatpush3.msk.msra.mxu0 %vm129_vm11, %v409_v29 }
  0x96   :  { %367 = vmatprep.subr.mxu0 %v407_v3  ;;  %vm127_vm13 = vcmp.eq.s32.totalorder %v498_v24, %v87_v43  ;;  %vm126_vm14 = vcmp.eq.s32.totalorder %v498_v24, %v84_v44 }
  0x97   :  { %368 = vmatpush3.msk.msra.mxu0 %vm128_vm12, %v409_v29 }
  0x98   :  { %369 = vmatprep.subr.mxu0 %v407_v3 }
  0x99   :  { %v81_v47 = vpop.permute.xlu0 %80  ;;  %370 = vmatpush3.msk.msra.mxu0 %vm127_vm13, %v409_v29  ;;  %v78_v50 = vpop.permute.xlu1 %77 }
  0x9a   :  { %371 = vmatprep.subr.mxu0 %v407_v3  ;;  %vm125_vm0 = vcmp.eq.s32.totalorder %v498_v24, %v81_v47  ;;  %vm124_vm1 = vcmp.eq.s32.totalorder %v498_v24, %v78_v50 }
  0x9b   :  { %372 = vmatpush3.msk.msra.mxu0 %vm126_vm14, %v409_v29 }
  0x9c   :  { %373 = vmatprep.subr.mxu0 %v407_v3 }
  0x9d   :  { %374 = vmatpush3.msk.msra.mxu0 %vm125_vm0, %v409_v29 }
  0x9e   :  { %375 = vmatprep.subr.mxu0 %v407_v3 }
  0x9f   :  { %376 = vmatpush3.msk.msra.mxu0 %vm124_vm1, %v409_v29 }
  0xa0   :  { %378 = vmatmul.mubr.f32.vlgmr.msra.gmra.mxu0 %v55_v51 }
 0x160   :  { %v239_v53 = vpop.f32.mrf.mxu0 }
 0x161   :  { %v243_v54 = vadd.f32 %v239_v53, %v172_v52 }
 0x162   :  { %v379_v55 = vpop.f32.mrf.mxu0 }
 0x163   :  { %244 = vst [vmem:[#allocation2] sm:$0x3] %v243_v54 }
 0x16a   :  { %v249_v57 = vld [vmem:[#allocation2] sm:$0x1]  ;;  %v250_v60 = vld [vmem:[#allocation2 + $0x1] sm:$0x1] }
 0x16b   :  { %v252_v58 = vmax.f32 %v249_v57, %v251_v56 }
 0x16d   :  { %392 = vrcp.f32 %v252_v58 }
 0x17a   :  { %v393_v59 = vpop.eup %392 }
 0x17b   :  { %v254_v61 = vmul.f32 %v393_v59, %v250_v60 }
 0x17d   :  { %v327_v62 = vadd.f32 -1.0, %v254_v61 }
 0x17f   :  { %v256_v63 = vmul.f32 %v327_v62, %v327_v62 }
 0x181   :  { %v257_v0 = vmul.f32 %v256_v63, %v256_v63 }
 0x183   :  { %v258_v1 = vmul.f32 %v327_v62, %v257_v0 }
 0x185   :  { %v259_v2 = vadd.f32 1.0, %v258_v1 }
 0x187   :  { %v260_v3 = vmax.f32 %v259_v2, %v251_v56 }
 0x189   :  { %394 = vlog2.f32 %v260_v3 }
 0x196   :  { %v395_v4 = vpop.eup %394 }
 0x197   :  { %v262_v5 = vmul.f32 0.6931472, %v395_v4 }
 0x199   :  { %v264_v6 = vsel %vm263_vm2, %v262_v5, 0.0 }
 0x19a   :  { %v266_v7 = vsel %vm54_vm15, %v264_v6, 0.0 }
 0x19b   :  { %267 = vadd.xlane.f32.xlu0 %v266_v7 }
 0x224   :  { %v268_v8 = vpop.xlane.xlu0 %267 }
 0x225   :  { %v269_v9 = vrot.slane %v268_v8, 4 }
 0x227   :  { %v270_v10 = vadd.f32 %v269_v9, %v268_v8 }
 0x229   :  { %v271_v11 = vrot.slane %v270_v10, 2 }
 0x22b   :  { %v272_v12 = vadd.f32 %v271_v11, %v270_v10 }
 0x22d   :  { %v273_v13 = vrot.slane %v272_v12, 1 }
 0x22f   :  { %v274_v14 = vadd.f32 %v273_v13, %v272_v12 }
 0x231   :  { %380 = vpush %v274_v14 }
 0x262   :  { %s381_s1 = spop %380 }
 0x263   :  { %s278_s4 = smul.f32 0.083333336, %s381_s1 }
 0x265   :  { %281 = sst [smem:[#allocation5]] %s278_s4 }
 0x266   :  { %289 = dma.smem_to_hbm %s410_s30, 16, %s564_s5, [#allocation6]  }
 0x267   :  { %404 = dma.done.wait [#allocation6], 16  }
 0x268   :  { %405 = vsyncadd [#allocation6], 4294967280 }
 0x269   :  { %293 = sfence }
 0x26a   :  { %294 = vsyncpa [#allocation6], 1 }

</bundles_post_ra>
